<compile_context>
chip_gen: v6e
topology: v6e:2x2x1
jax: 0.10.0
libtpu: 0.0.40
codegen_flags: <defaults>
</compile_context>

<pallas_src>
import math

import jax
import jax.numpy as jnp
from jax import lax
from jax.experimental import pallas as pl
from jax.experimental.pallas import tpu as pltpu


_ENC_WEIGHTS = ["wq_t", "wk_t", "wv_t", "bq", "bk", "bv",
                "wo_t", "bo", "g1", "be1",
                "w1_t", "b1", "w2_t", "b2", "g2", "be2"]


def _round_up(x, m):
    return (x + m - 1) // m * m


def _tpu_vmem_capacity_bytes():
    """Per-core physical VMEM (generation-aware) with a conservative fallback."""
    try:
        info = pltpu.get_tpu_info()
        cap = getattr(info, "vmem_capacity_bytes", None)
        if cap:
            return int(cap)
    except Exception:
        pass
    return 64 * 1024 * 1024          # v7x per-TC size (smallest modern part)


def _pick_block_b(B, S, target_rows):
    """Largest batch-block whose row count fits `target_rows`, preferring an
    even grid (>= 2 steps) so v7x's two TensorCores both get work."""
    divisors = [c for c in range(1, B + 1) if B % c == 0 and c * S <= target_rows]
    if not divisors:
        return 1
    even = [c for c in divisors if (B // c) % 2 == 0]
    return max(even) if even else max(divisors)


# ----------------------------------------------------------------------------
# Kernel 1: embedding-fed encoder layer (causal self-attn + FFN + 2x LayerNorm)
# ----------------------------------------------------------------------------
def encoder_kernel(x_ref,
                   wq_ref, wk_ref, wv_ref, bq_ref, bk_ref, bv_ref,
                   wo_ref, bo_ref,
                   g1_ref, be1_ref,
                   w1_ref, b1_ref, w2_ref, b2_ref,
                   g2_ref, be2_ref,
                   y_ref):
    x = x_ref[...]                                   # (BT, S, D) f32, emb*sqrt(D)+pe
    BT, S, D = x.shape
    x2 = x.reshape(BT * S, D)                        # flatten rows -> bigger MXU tiles
    xb = x2.astype(jnp.bfloat16)

    # --- causal self-attention (nhead = 1), 1/sqrt(D) pre-folded into wq/bq ---
    q = jnp.dot(xb, wq_ref[...], preferred_element_type=jnp.float32) + bq_ref[...]
    k = jnp.dot(xb, wk_ref[...], preferred_element_type=jnp.float32) + bk_ref[...]
    v = jnp.dot(xb, wv_ref[...], preferred_element_type=jnp.float32) + bv_ref[...]
    q3 = q.reshape(BT, S, D).astype(jnp.bfloat16)
    k3 = k.reshape(BT, S, D).astype(jnp.bfloat16)
    v3 = v.reshape(BT, S, D).astype(jnp.bfloat16)

    # batched scores via einsum (no explicit k transpose)
    scores = jnp.einsum('bqd,bkd->bqk', q3, k3,
                        preferred_element_type=jnp.float32)      # (BT, S, S) f32

    row = lax.broadcasted_iota(jnp.int32, (S, S), 0)
    col = lax.broadcasted_iota(jnp.int32, (S, S), 1)
    mask = col <= row                                            # True = keep
    scores = jnp.where(mask, scores, -1e30)                      # finite mask (scores are f32)

    m = jnp.max(scores, axis=-1, keepdims=True)
    p = jnp.exp(scores - m)
    inv = pl.reciprocal(jnp.sum(p, axis=-1, keepdims=True), approx=True)  # EUP slot
    p = p * inv

    attn = jnp.einsum('bqk,bkd->bqd', p.astype(jnp.bfloat16), v3,
                      preferred_element_type=jnp.float32)        # (BT, S, D) f32
    attn2 = attn.reshape(BT * S, D)
    attn_out = jnp.dot(attn2.astype(jnp.bfloat16), wo_ref[...],
                       preferred_element_type=jnp.float32) + bo_ref[...]

    # --- residual + LayerNorm1 (f32) ---
    h = x2 + attn_out
    mu = jnp.mean(h, axis=-1, keepdims=True)
    var = jnp.mean((h - mu) ** 2, axis=-1, keepdims=True)
    h = (h - mu) * lax.rsqrt(var + 1e-5) * g1_ref[...] + be1_ref[...]

    # --- feed-forward: Linear -> ReLU -> Linear ---
    ff = jnp.dot(h.astype(jnp.bfloat16), w1_ref[...],
                 preferred_element_type=jnp.float32) + b1_ref[...]
    ff = jnp.maximum(ff, 0.0)
    ff = jnp.dot(ff.astype(jnp.bfloat16), w2_ref[...],
                 preferred_element_type=jnp.float32) + b2_ref[...]

    # --- residual + LayerNorm2 (f32) ---
    y = h + ff
    mu2 = jnp.mean(y, axis=-1, keepdims=True)
    var2 = jnp.mean((y - mu2) ** 2, axis=-1, keepdims=True)
    y = (y - mu2) * lax.rsqrt(var2 + 1e-5) * g2_ref[...] + be2_ref[...]

    y_ref[...] = y.reshape(BT, S, D).astype(y_ref.dtype)         # bf16 out


# ----------------------------------------------------------------------------
# Kernel 2: vocab projection; activations resident, wout streamed in (D, TN)
# lane-dense tiles over a 1-D vocab grid, output written unpadded (R, ntoken).
# ----------------------------------------------------------------------------
def vocab_proj_kernel(y_ref, w_ref, b_ref, o_ref):
    o_ref[...] = (jnp.dot(y_ref[...], w_ref[...],
                          preferred_element_type=jnp.float32)
                  + b_ref[...]).astype(o_ref.dtype)


# ----------------------------------------------------------------------------
# Wrapper
# ----------------------------------------------------------------------------
def transformer_forward(token_ids, params, *, tn=None):
    """token_ids: (S, B) int32 -> logits (S, B, ntoken) float32."""
    S, B = token_ids.shape
    emb = params["embedding"]                        # (ntoken, D) f32
    ntoken, D = emb.shape

    # ---- generation-aware sizing ----
    vmem_cap = _tpu_vmem_capacity_bytes()
    vmem_limit = max(32 * 1024 * 1024, (vmem_cap * 3) // 4)   # 48 MiB v7x, 96 MiB v5e/v6e
    small_vmem = vmem_cap <= 64 * 1024 * 1024
    if tn is None:
        tn = 1024 if small_vmem else 2048
    tn = max(128, (tn // 128) * 128)
    target_rows = 512 if small_vmem else 1024

    # glue: embedding gather, sqrt(D) scaling, positional encoding, layout change
    x = jnp.take(emb, token_ids, axis=0) * math.sqrt(D)          # (S, B, D)
    x = x + params["pe"][:S]                                     # pe: (S, 1, D)
    x = jnp.transpose(x, (1, 0, 2)).astype(jnp.float32)          # (B, S, D)

    # ---- encoder layer ----
    block_b = _pick_block_b(B, S, target_rows)
    enc_weights = [params[name] for name in _ENC_WEIGHTS]
    enc_specs = ([pl.BlockSpec((block_b, S, D), lambda i: (i, 0, 0))] +
                 [pl.BlockSpec(w.shape, lambda i: (0, 0)) for w in enc_weights])

    y = pl.pallas_call(
        encoder_kernel,
        out_shape=jax.ShapeDtypeStruct((B, S, D), jnp.bfloat16),
        grid=(B // block_b,),
        in_specs=enc_specs,
        out_specs=pl.BlockSpec((block_b, S, D), lambda i: (i, 0, 0)),
        compiler_params=pltpu.CompilerParams(
            dimension_semantics=("parallel",),
            vmem_limit_bytes=vmem_limit),
    )(x, *enc_weights)

    # ---- vocab projection over flattened (seq-major) rows ----
    # Transposing the small (B,S,D) activations here is what lets the logits
    # come out already in (S, B, ntoken) order (final reshape is metadata-only).
    y_sb = jnp.transpose(y, (1, 0, 2)).reshape(S * B, D)         # (R, D) bf16, resident
    R = S * B

    # vocab tile width: lane-dense (128-multiple) unless the whole vocab is a
    # single tiny tile (block == full dim, always legal).
    n128 = _round_up(ntoken, 128)
    if ntoken < 256 and ntoken <= tn:
        tn_eff = ntoken                                          # one full-width tile
    else:
        tn_eff = min(tn, n128)
        # keep the per-step working set under ~80% of the VMEM cap
        step_bytes = lambda t: (R * D * 2) + 2 * (D * t * 2 + t * 4 + R * t * 4)
        while tn_eff > 128 and step_bytes(tn_eff) > int(vmem_limit * 0.8):
            tn_eff -= 128
        # prefer an even number of vocab tiles (v7x megacore), never shrinking >2x
        if pl.cdiv(ntoken, tn_eff) % 2 == 1:
            for cand in range(tn_eff, max(128, tn_eff // 2) - 1, -128):
                if pl.cdiv(ntoken, cand) % 2 == 0:
                    tn_eff = cand
                    break
    grid_n = pl.cdiv(ntoken, tn_eff)

    # make the streamed weight/bias exactly grid_n * tn_eff wide (zero columns),
    # so every weight tile read is in-bounds; the output itself is unpadded.
    wout = params["wout_t"]                                      # (D, >=ntoken pad128) bf16
    bout = params["bout"]                                        # (1, same) f32
    n_cols = grid_n * tn_eff
    if wout.shape[1] > n_cols:
        wout = wout[:, :n_cols]
        bout = bout[:, :n_cols]
    elif wout.shape[1] < n_cols:
        padc = n_cols - wout.shape[1]
        wout = jnp.pad(wout, ((0, 0), (0, padc)))
        bout = jnp.pad(bout, ((0, 0), (0, padc)))

    logits = pl.pallas_call(
        vocab_proj_kernel,
        out_shape=jax.ShapeDtypeStruct((R, ntoken), jnp.float32),
        grid=(grid_n,),
        in_specs=[pl.BlockSpec((R, D), lambda n: (0, 0)),        # resident activations
                  pl.BlockSpec((D, tn_eff), lambda n: (0, n)),   # streamed weight tile
                  pl.BlockSpec((1, tn_eff), lambda n: (0, n))],  # streamed bias tile
        out_specs=pl.BlockSpec((R, tn_eff), lambda n: (0, n)),   # ragged last tile masked
        compiler_params=pltpu.CompilerParams(
            dimension_semantics=("parallel",),
            vmem_limit_bytes=vmem_limit),
    )(y_sb, wout, bout)

    # rows are (s, b)-ordered and the vocab axis is already unpadded ->
    # metadata-only reshape, no slice, no extra HBM pass over the logits.
    return logits.reshape(S, B, ntoken)


# ----------------------------------------------------------------------------
# Parameters / reference
# ----------------------------------------------------------------------------
def positional_encoding(max_len, d_model):
    position = jnp.arange(max_len, dtype=jnp.float32)[:, None]
    div_term = jnp.exp(jnp.arange(0, d_model, 2, dtype=jnp.float32)
                       * (-math.log(10000.0) / d_model))
    pe = jnp.zeros((max_len, 1, d_model), jnp.float32)
    pe = pe.at[:, 0, 0::2].set(jnp.sin(position * div_term))
    pe = pe.at[:, 0, 1::2].set(jnp.cos(position * div_term))
    return pe


def init_params(key, ntoken, d_model, d_hid, max_len):
    ks = jax.random.split(key, 16)
    u = lambda k, shape, a: jax.random.uniform(k, shape, jnp.float32, -a, a)
    bf = jnp.bfloat16

    # Module's init_weights: embedding and decoder uniform(-0.1, 0.1), decoder bias zero.
    embedding = u(ks[0], (ntoken, d_model), 0.1)
    wout = u(ks[1], (ntoken, d_model), 0.1)

    a_attn = 1.0 / math.sqrt(d_model)
    wq = u(ks[2], (d_model, d_model), a_attn)
    wk = u(ks[3], (d_model, d_model), a_attn)
    wv = u(ks[4], (d_model, d_model), a_attn)
    bq = jnp.zeros((d_model,), jnp.float32)          # nn.MultiheadAttention in_proj_bias init
    bk = jnp.zeros((d_model,), jnp.float32)
    bv = jnp.zeros((d_model,), jnp.float32)
    wo = u(ks[5], (d_model, d_model), a_attn)
    bo = jnp.zeros((d_model,), jnp.float32)

    a1 = 1.0 / math.sqrt(d_model)
    w1 = u(ks[6], (d_hid, d_model), a1)
    b1 = u(ks[7], (d_hid,), a1)
    a2 = 1.0 / math.sqrt(d_hid)
    w2 = u(ks[8], (d_model, d_hid), a2)
    b2 = u(ks[9], (d_model,), a2)

    g1 = jnp.ones((d_model,), jnp.float32)
    be1 = jnp.zeros((d_model,), jnp.float32)
    g2 = jnp.ones((d_model,), jnp.float32)
    be2 = jnp.zeros((d_model,), jnp.float32)

    # fold the 1/sqrt(D) attention scale into wq / bq
    scale = 1.0 / math.sqrt(d_model)

    # pad the vocab projection to a 128-multiple with zero columns; the wrapper
    # pads/slices further to an exact multiple of the chosen vocab tile.
    n_pad = _round_up(ntoken, 128)
    wout_t = jnp.zeros((d_model, n_pad), jnp.float32).at[:, :ntoken].set(wout.T)
    bout = jnp.zeros((1, n_pad), jnp.float32)

    r = lambda b: b.reshape(1, -1)
    return {
        "embedding": embedding,
        "pe": positional_encoding(max_len, d_model),
        # pre-transposed weights so the kernel does plain (rows,D)@(D,N) matmuls;
        # matmul operands stored as bf16 (f32 accumulation inside the kernels)
        "wq_t": (wq.T * scale).astype(bf), "wk_t": wk.T.astype(bf), "wv_t": wv.T.astype(bf),
        "bq": r(bq * scale), "bk": r(bk), "bv": r(bv),
        "wo_t": wo.T.astype(bf), "bo": r(bo),
        "g1": r(g1), "be1": r(be1),
        "w1_t": w1.T.astype(bf), "b1": r(b1),
        "w2_t": w2.T.astype(bf), "b2": r(b2),
        "g2": r(g2), "be2": r(be2),
        "wout_t": wout_t.astype(bf), "bout": bout,
    }


def reference_forward(token_ids, params):
    """Pure-JAX reference mirroring the PyTorch forward (eval mode) with the
    same bf16-input / f32-accumulate matmul policy as the kernel."""
    S, B = token_ids.shape
    emb = params["embedding"]
    ntoken, D = emb.shape
    bf = jnp.bfloat16
    dot = lambda a, b: jnp.dot(a.astype(bf), b.astype(bf),
                               preferred_element_type=jnp.float32)

    x = jnp.take(emb, token_ids, axis=0) * math.sqrt(D) + params["pe"][:S]
    x = jnp.transpose(x, (1, 0, 2)).astype(jnp.float32)          # (B, S, D)

    def per_example(xb):
        q = dot(xb, params["wq_t"]) + params["bq"]               # scale pre-folded
        k = dot(xb, params["wk_t"]) + params["bk"]
        v = dot(xb, params["wv_t"]) + params["bv"]
        scores = dot(q, k.T)
        mask = jnp.tril(jnp.ones((S, S), bool))
        scores = jnp.where(mask, scores, -1e30)
        p = jax.nn.softmax(scores, axis=-1)
        attn = dot(dot(p, v), params["wo_t"]) + params["bo"]
        h = xb + attn
        h = (h - h.mean(-1, keepdims=True)) * lax.rsqrt(h.var(-1, keepdims=True) + 1e-5)
        h = h * params["g1"] + params["be1"]
        ff = jnp.maximum(dot(h, params["w1_t"]) + params["b1"], 0.0)
        ff = dot(ff, params["w2_t"]) + params["b2"]
        y = h + ff
        y = (y - y.mean(-1, keepdims=True)) * lax.rsqrt(y.var(-1, keepdims=True) + 1e-5)
        y = y * params["g2"] + params["be2"]
        y = y.astype(bf)                                         # kernel stores y as bf16
        return dot(y, params["wout_t"]) + params["bout"]

    out = jax.vmap(per_example)(x)[:, :, :ntoken]                # (B, S, ntoken)
    return jnp.transpose(out, (1, 0, 2))


if __name__ == "__main__":
    # Small shapes consistent with the module (seq-first transformer LM):
    S, B = 8, 2
    d_model, d_hid_small, ntoken = 32, 64, 50    # module globals use d_hid=1024, nhead=1, nlayers=1

    key = jax.random.PRNGKey(0)
    kp, kt = jax.random.split(key)
    params = init_params(kp, ntoken, d_model, d_hid_small, max_len=S)
    token_ids = jax.random.randint(kt, (S, B), 0, ntoken, dtype=jnp.int32)

    out = transformer_forward(token_ids, params)
    out = jax.block_until_ready(out)

    ref = reference_forward(token_ids, params)
    assert out.shape == (S, B, ntoken), out.shape
    assert bool(jnp.all(jnp.isfinite(out)))
    max_err = float(jnp.max(jnp.abs(out - ref)))
    assert bool(jnp.allclose(out, ref, atol=2e-2, rtol=2e-2)), f"mismatch vs reference: {max_err}"

    print("KERNEL_OK")
</pallas_src>

<mosaic_0001>
module attributes {stable_mosaic.version = 11 : i64} {
  func.func @encoder_kernel(%arg0: i32, %arg1: memref<1x8x32xf32, #tpu.memory_space<vmem>>, %arg2: memref<32x32xbf16, #tpu.memory_space<vmem>>, %arg3: memref<32x32xbf16, #tpu.memory_space<vmem>>, %arg4: memref<32x32xbf16, #tpu.memory_space<vmem>>, %arg5: memref<1x32xf32, #tpu.memory_space<vmem>>, %arg6: memref<1x32xf32, #tpu.memory_space<vmem>>, %arg7: memref<1x32xf32, #tpu.memory_space<vmem>>, %arg8: memref<32x32xbf16, #tpu.memory_space<vmem>>, %arg9: memref<1x32xf32, #tpu.memory_space<vmem>>, %arg10: memref<1x32xf32, #tpu.memory_space<vmem>>, %arg11: memref<1x32xf32, #tpu.memory_space<vmem>>, %arg12: memref<32x64xbf16, #tpu.memory_space<vmem>>, %arg13: memref<1x64xf32, #tpu.memory_space<vmem>>, %arg14: memref<64x32xbf16, #tpu.memory_space<vmem>>, %arg15: memref<1x32xf32, #tpu.memory_space<vmem>>, %arg16: memref<1x32xf32, #tpu.memory_space<vmem>>, %arg17: memref<1x32xf32, #tpu.memory_space<vmem>>, %arg18: memref<1x8x32xbf16, #tpu.memory_space<vmem>>) attributes {dimension_semantics = [#tpu.dimension_semantics<parallel>], iteration_bounds = array<i64: 2>, scalar_prefetch = 0 : i64, scratch_operands = 0 : i64, tpu.core_type = #tpu.core_type<tc>, window_params = [{transform_indices = @transform_0, window_bounds = array<i64: 1, 8, 32>}, {pipeline_mode = #tpu.pipeline_mode<synchronous>, transform_indices = @transform_1, window_bounds = array<i64: 32, 32>}, {pipeline_mode = #tpu.pipeline_mode<synchronous>, transform_indices = @transform_2, window_bounds = array<i64: 32, 32>}, {pipeline_mode = #tpu.pipeline_mode<synchronous>, transform_indices = @transform_3, window_bounds = array<i64: 32, 32>}, {pipeline_mode = #tpu.pipeline_mode<synchronous>, transform_indices = @transform_4, window_bounds = array<i64: 1, 32>}, {pipeline_mode = #tpu.pipeline_mode<synchronous>, transform_indices = @transform_5, window_bounds = array<i64: 1, 32>}, {pipeline_mode = #tpu.pipeline_mode<synchronous>, transform_indices = @transform_6, window_bounds = array<i64: 1, 32>}, {pipeline_mode = #tpu.pipeline_mode<synchronous>, transform_indices = @transform_7, window_bounds = array<i64: 32, 32>}, {pipeline_mode = #tpu.pipeline_mode<synchronous>, transform_indices = @transform_8, window_bounds = array<i64: 1, 32>}, {pipeline_mode = #tpu.pipeline_mode<synchronous>, transform_indices = @transform_9, window_bounds = array<i64: 1, 32>}, {pipeline_mode = #tpu.pipeline_mode<synchronous>, transform_indices = @transform_10, window_bounds = array<i64: 1, 32>}, {pipeline_mode = #tpu.pipeline_mode<synchronous>, transform_indices = @transform_11, window_bounds = array<i64: 32, 64>}, {pipeline_mode = #tpu.pipeline_mode<synchronous>, transform_indices = @transform_12, window_bounds = array<i64: 1, 64>}, {pipeline_mode = #tpu.pipeline_mode<synchronous>, transform_indices = @transform_13, window_bounds = array<i64: 64, 32>}, {pipeline_mode = #tpu.pipeline_mode<synchronous>, transform_indices = @transform_14, window_bounds = array<i64: 1, 32>}, {pipeline_mode = #tpu.pipeline_mode<synchronous>, transform_indices = @transform_15, window_bounds = array<i64: 1, 32>}, {pipeline_mode = #tpu.pipeline_mode<synchronous>, transform_indices = @transform_16, window_bounds = array<i64: 1, 32>}, {transform_indices = @transform_17, window_bounds = array<i64: 1, 8, 32>}]} {
    %c0 = arith.constant 0 : index
    %c0_0 = arith.constant 0 : index
    %c0_1 = arith.constant 0 : index
    %0 = vector.load %arg1[%c0, %c0_0, %c0_1] : memref<1x8x32xf32, #tpu.memory_space<vmem>>, vector<1x8x32xf32>
    %1 = vector.shape_cast %0 : vector<1x8x32xf32> to vector<8x32xf32>
    %2 = arith.truncf %1 : vector<8x32xf32> to vector<8x32xbf16>
    %c0_2 = arith.constant 0 : index
    %c0_3 = arith.constant 0 : index
    %3 = vector.load %arg2[%c0_2, %c0_3] : memref<32x32xbf16, #tpu.memory_space<vmem>>, vector<32x32xbf16>
    %cst = arith.constant dense<0.000000e+00> : vector<8x32xf32>
    %4 = tpu.matmul %2, %3, %cst {dimension_numbers = #tpu.dot_dimension_numbers<[1], [0], [0], [1], [0, 0, 1, 1], [], []>} : vector<8x32xbf16>, vector<32x32xbf16>, vector<8x32xf32> -> vector<8x32xf32>
    %c0_4 = arith.constant 0 : index
    %c0_5 = arith.constant 0 : index
    %5 = vector.load %arg5[%c0_4, %c0_5] : memref<1x32xf32, #tpu.memory_space<vmem>>, vector<1x32xf32>
    %6 = vector.broadcast %5 : vector<1x32xf32> to vector<8x32xf32>
    %7 = arith.addf %4, %6 : vector<8x32xf32>
    %c0_6 = arith.constant 0 : index
    %c0_7 = arith.constant 0 : index
    %8 = vector.load %arg3[%c0_6, %c0_7] : memref<32x32xbf16, #tpu.memory_space<vmem>>, vector<32x32xbf16>
    %cst_8 = arith.constant dense<0.000000e+00> : vector<8x32xf32>
    %9 = tpu.matmul %2, %8, %cst_8 {dimension_numbers = #tpu.dot_dimension_numbers<[1], [0], [0], [1], [0, 0, 1, 1], [], []>} : vector<8x32xbf16>, vector<32x32xbf16>, vector<8x32xf32> -> vector<8x32xf32>
    %c0_9 = arith.constant 0 : index
    %c0_10 = arith.constant 0 : index
    %10 = vector.load %arg6[%c0_9, %c0_10] : memref<1x32xf32, #tpu.memory_space<vmem>>, vector<1x32xf32>
    %11 = vector.broadcast %10 : vector<1x32xf32> to vector<8x32xf32>
    %12 = arith.addf %9, %11 : vector<8x32xf32>
    %c0_11 = arith.constant 0 : index
    %c0_12 = arith.constant 0 : index
    %13 = vector.load %arg4[%c0_11, %c0_12] : memref<32x32xbf16, #tpu.memory_space<vmem>>, vector<32x32xbf16>
    %cst_13 = arith.constant dense<0.000000e+00> : vector<8x32xf32>
    %14 = tpu.matmul %2, %13, %cst_13 {dimension_numbers = #tpu.dot_dimension_numbers<[1], [0], [0], [1], [0, 0, 1, 1], [], []>} : vector<8x32xbf16>, vector<32x32xbf16>, vector<8x32xf32> -> vector<8x32xf32>
    %c0_14 = arith.constant 0 : index
    %c0_15 = arith.constant 0 : index
    %15 = vector.load %arg7[%c0_14, %c0_15] : memref<1x32xf32, #tpu.memory_space<vmem>>, vector<1x32xf32>
    %16 = vector.broadcast %15 : vector<1x32xf32> to vector<8x32xf32>
    %17 = arith.addf %14, %16 : vector<8x32xf32>
    %18 = vector.shape_cast %7 : vector<8x32xf32> to vector<1x8x32xf32>
    %19 = arith.truncf %18 : vector<1x8x32xf32> to vector<1x8x32xbf16>
    %20 = vector.shape_cast %12 : vector<8x32xf32> to vector<1x8x32xf32>
    %21 = arith.truncf %20 : vector<1x8x32xf32> to vector<1x8x32xbf16>
    %22 = vector.shape_cast %17 : vector<8x32xf32> to vector<1x8x32xf32>
    %23 = arith.truncf %22 : vector<1x8x32xf32> to vector<1x8x32xbf16>
    "tpu.trace_start"() <{level = 10 : i32, message = "bqd,bkd->bqk"}> : () -> ()
    %cst_16 = arith.constant dense<0.000000e+00> : vector<1x8x8xf32>
    %24 = tpu.matmul %19, %21, %cst_16 {dimension_numbers = #tpu.dot_dimension_numbers<[2], [2], [1], [1], [0, 0, 0, 1, 1, 1], [0], [0]>} : vector<1x8x32xbf16>, vector<1x8x32xbf16>, vector<1x8x8xf32> -> vector<1x8x8xf32>
    "tpu.trace_stop"() : () -> ()
    %25 = tpu.iota {dimensions = array<i32: 0>} : vector<8x8xi32>
    %26 = tpu.iota {dimensions = array<i32: 1>} : vector<8x8xi32>
    %27 = arith.cmpi sle, %26, %25 : vector<8x8xi32>
    %cst_17 = arith.constant -1.000000e+30 : f32
    %28 = vector.shape_cast %27 : vector<8x8xi1> to vector<1x8x8xi1>
    %29 = vector.broadcast %cst_17 : f32 to vector<1x8x8xf32>
    %30 = arith.select %28, %24, %29 : vector<1x8x8xi1>, vector<1x8x8xf32>
    %cst_18 = arith.constant dense<0xFF800000> : vector<1x8xf32>
    %31 = vector.multi_reduction <maximumf>, %30, %cst_18 [2] : vector<1x8x8xf32> to vector<1x8xf32>
    %32 = vector.shape_cast %31 : vector<1x8xf32> to vector<1x8x1xf32>
    %33 = vector.broadcast %32 : vector<1x8x1xf32> to vector<1x8x8xf32>
    %34 = arith.subf %30, %33 : vector<1x8x8xf32>
    %35 = math.exp %34 : vector<1x8x8xf32>
    %cst_19 = arith.constant dense<0.000000e+00> : vector<1x8xf32>
    %36 = vector.multi_reduction <add>, %35, %cst_19 [2] : vector<1x8x8xf32> to vector<1x8xf32>
    %37 = vector.shape_cast %36 : vector<1x8xf32> to vector<1x8x1xf32>
    %38 = tpu.reciprocal %37 {approx = true} : vector<1x8x1xf32> -> vector<1x8x1xf32>
    %39 = vector.broadcast %38 : vector<1x8x1xf32> to vector<1x8x8xf32>
    %40 = arith.mulf %35, %39 : vector<1x8x8xf32>
    %41 = arith.truncf %40 : vector<1x8x8xf32> to vector<1x8x8xbf16>
    "tpu.trace_start"() <{level = 10 : i32, message = "bqk,bkd->bqd"}> : () -> ()
    %cst_20 = arith.constant dense<0.000000e+00> : vector<1x8x32xf32>
    %42 = tpu.matmul %41, %23, %cst_20 {dimension_numbers = #tpu.dot_dimension_numbers<[2], [1], [1], [2], [0, 0, 0, 1, 1, 2], [0], [0]>} : vector<1x8x8xbf16>, vector<1x8x32xbf16>, vector<1x8x32xf32> -> vector<1x8x32xf32>
    "tpu.trace_stop"() : () -> ()
    %43 = vector.shape_cast %42 : vector<1x8x32xf32> to vector<8x32xf32>
    %44 = arith.truncf %43 : vector<8x32xf32> to vector<8x32xbf16>
    %c0_21 = arith.constant 0 : index
    %c0_22 = arith.constant 0 : index
    %45 = vector.load %arg8[%c0_21, %c0_22] : memref<32x32xbf16, #tpu.memory_space<vmem>>, vector<32x32xbf16>
    %cst_23 = arith.constant dense<0.000000e+00> : vector<8x32xf32>
    %46 = tpu.matmul %44, %45, %cst_23 {dimension_numbers = #tpu.dot_dimension_numbers<[1], [0], [0], [1], [0, 0, 1, 1], [], []>} : vector<8x32xbf16>, vector<32x32xbf16>, vector<8x32xf32> -> vector<8x32xf32>
    %c0_24 = arith.constant 0 : index
    %c0_25 = arith.constant 0 : index
    %47 = vector.load %arg9[%c0_24, %c0_25] : memref<1x32xf32, #tpu.memory_space<vmem>>, vector<1x32xf32>
    %48 = vector.broadcast %47 : vector<1x32xf32> to vector<8x32xf32>
    %49 = arith.addf %46, %48 : vector<8x32xf32>
    %50 = arith.addf %1, %49 : vector<8x32xf32>
    %cst_26 = arith.constant dense<0.000000e+00> : vector<8xf32>
    %51 = vector.multi_reduction <add>, %50, %cst_26 [1] : vector<8x32xf32> to vector<8xf32>
    %52 = vector.shape_cast %51 : vector<8xf32> to vector<8x1xf32>
    %cst_27 = arith.constant 3.200000e+01 : f32
    %53 = vector.broadcast %cst_27 : f32 to vector<8x1xf32>
    %54 = arith.divf %52, %53 : vector<8x1xf32>
    %55 = vector.broadcast %54 : vector<8x1xf32> to vector<8x32xf32>
    %56 = arith.subf %50, %55 : vector<8x32xf32>
    %57 = arith.mulf %56, %56 : vector<8x32xf32>
    %cst_28 = arith.constant dense<0.000000e+00> : vector<8xf32>
    %58 = vector.multi_reduction <add>, %57, %cst_28 [1] : vector<8x32xf32> to vector<8xf32>
    %59 = vector.shape_cast %58 : vector<8xf32> to vector<8x1xf32>
    %cst_29 = arith.constant 3.200000e+01 : f32
    %60 = vector.broadcast %cst_29 : f32 to vector<8x1xf32>
    %61 = arith.divf %59, %60 : vector<8x1xf32>
    %62 = vector.broadcast %54 : vector<8x1xf32> to vector<8x32xf32>
    %63 = arith.subf %50, %62 : vector<8x32xf32>
    %cst_30 = arith.constant 9.99999974E-6 : f32
    %64 = vector.broadcast %cst_30 : f32 to vector<8x1xf32>
    %65 = arith.addf %61, %64 : vector<8x1xf32>
    %66 = math.rsqrt %65 : vector<8x1xf32>
    %67 = vector.broadcast %66 : vector<8x1xf32> to vector<8x32xf32>
    %68 = arith.mulf %63, %67 : vector<8x32xf32>
    %c0_31 = arith.constant 0 : index
    %c0_32 = arith.constant 0 : index
    %69 = vector.load %arg10[%c0_31, %c0_32] : memref<1x32xf32, #tpu.memory_space<vmem>>, vector<1x32xf32>
    %70 = vector.broadcast %69 : vector<1x32xf32> to vector<8x32xf32>
    %71 = arith.mulf %68, %70 : vector<8x32xf32>
    %c0_33 = arith.constant 0 : index
    %c0_34 = arith.constant 0 : index
    %72 = vector.load %arg11[%c0_33, %c0_34] : memref<1x32xf32, #tpu.memory_space<vmem>>, vector<1x32xf32>
    %73 = vector.broadcast %72 : vector<1x32xf32> to vector<8x32xf32>
    %74 = arith.addf %71, %73 : vector<8x32xf32>
    %75 = arith.truncf %74 : vector<8x32xf32> to vector<8x32xbf16>
    %c0_35 = arith.constant 0 : index
    %c0_36 = arith.constant 0 : index
    %76 = vector.load %arg12[%c0_35, %c0_36] : memref<32x64xbf16, #tpu.memory_space<vmem>>, vector<32x64xbf16>
    %cst_37 = arith.constant dense<0.000000e+00> : vector<8x64xf32>
    %77 = tpu.matmul %75, %76, %cst_37 {dimension_numbers = #tpu.dot_dimension_numbers<[1], [0], [0], [1], [0, 0, 1, 1], [], []>} : vector<8x32xbf16>, vector<32x64xbf16>, vector<8x64xf32> -> vector<8x64xf32>
    %c0_38 = arith.constant 0 : index
    %c0_39 = arith.constant 0 : index
    %78 = vector.load %arg13[%c0_38, %c0_39] : memref<1x64xf32, #tpu.memory_space<vmem>>, vector<1x64xf32>
    %79 = vector.broadcast %78 : vector<1x64xf32> to vector<8x64xf32>
    %80 = arith.addf %77, %79 : vector<8x64xf32>
    %cst_40 = arith.constant 0.000000e+00 : f32
    %81 = vector.broadcast %cst_40 : f32 to vector<8x64xf32>
    %82 = arith.maximumf %80, %81 : vector<8x64xf32>
    %83 = arith.truncf %82 : vector<8x64xf32> to vector<8x64xbf16>
    %c0_41 = arith.constant 0 : index
    %c0_42 = arith.constant 0 : index
    %84 = vector.load %arg14[%c0_41, %c0_42] : memref<64x32xbf16, #tpu.memory_space<vmem>>, vector<64x32xbf16>
    %cst_43 = arith.constant dense<0.000000e+00> : vector<8x32xf32>
    %85 = tpu.matmul %83, %84, %cst_43 {dimension_numbers = #tpu.dot_dimension_numbers<[1], [0], [0], [1], [0, 0, 1, 1], [], []>} : vector<8x64xbf16>, vector<64x32xbf16>, vector<8x32xf32> -> vector<8x32xf32>
    %c0_44 = arith.constant 0 : index
    %c0_45 = arith.constant 0 : index
    %86 = vector.load %arg15[%c0_44, %c0_45] : memref<1x32xf32, #tpu.memory_space<vmem>>, vector<1x32xf32>
    %87 = vector.broadcast %86 : vector<1x32xf32> to vector<8x32xf32>
    %88 = arith.addf %85, %87 : vector<8x32xf32>
    %89 = arith.addf %74, %88 : vector<8x32xf32>
    %cst_46 = arith.constant dense<0.000000e+00> : vector<8xf32>
    %90 = vector.multi_reduction <add>, %89, %cst_46 [1] : vector<8x32xf32> to vector<8xf32>
    %91 = vector.shape_cast %90 : vector<8xf32> to vector<8x1xf32>
    %cst_47 = arith.constant 3.200000e+01 : f32
    %92 = vector.broadcast %cst_47 : f32 to vector<8x1xf32>
    %93 = arith.divf %91, %92 : vector<8x1xf32>
    %94 = vector.broadcast %93 : vector<8x1xf32> to vector<8x32xf32>
    %95 = arith.subf %89, %94 : vector<8x32xf32>
    %96 = arith.mulf %95, %95 : vector<8x32xf32>
    %cst_48 = arith.constant dense<0.000000e+00> : vector<8xf32>
    %97 = vector.multi_reduction <add>, %96, %cst_48 [1] : vector<8x32xf32> to vector<8xf32>
    %98 = vector.shape_cast %97 : vector<8xf32> to vector<8x1xf32>
    %cst_49 = arith.constant 3.200000e+01 : f32
    %99 = vector.broadcast %cst_49 : f32 to vector<8x1xf32>
    %100 = arith.divf %98, %99 : vector<8x1xf32>
    %101 = vector.broadcast %93 : vector<8x1xf32> to vector<8x32xf32>
    %102 = arith.subf %89, %101 : vector<8x32xf32>
    %cst_50 = arith.constant 9.99999974E-6 : f32
    %103 = vector.broadcast %cst_50 : f32 to vector<8x1xf32>
    %104 = arith.addf %100, %103 : vector<8x1xf32>
    %105 = math.rsqrt %104 : vector<8x1xf32>
    %106 = vector.broadcast %105 : vector<8x1xf32> to vector<8x32xf32>
    %107 = arith.mulf %102, %106 : vector<8x32xf32>
    %c0_51 = arith.constant 0 : index
    %c0_52 = arith.constant 0 : index
    %108 = vector.load %arg16[%c0_51, %c0_52] : memref<1x32xf32, #tpu.memory_space<vmem>>, vector<1x32xf32>
    %109 = vector.broadcast %108 : vector<1x32xf32> to vector<8x32xf32>
    %110 = arith.mulf %107, %109 : vector<8x32xf32>
    %c0_53 = arith.constant 0 : index
    %c0_54 = arith.constant 0 : index
    %111 = vector.load %arg17[%c0_53, %c0_54] : memref<1x32xf32, #tpu.memory_space<vmem>>, vector<1x32xf32>
    %112 = vector.broadcast %111 : vector<1x32xf32> to vector<8x32xf32>
    %113 = arith.addf %110, %112 : vector<8x32xf32>
    %114 = vector.shape_cast %113 : vector<8x32xf32> to vector<1x8x32xf32>
    %115 = arith.truncf %114 : vector<1x8x32xf32> to vector<1x8x32xbf16>
    %c0_55 = arith.constant 0 : index
    %c0_56 = arith.constant 0 : index
    %c0_57 = arith.constant 0 : index
    %116 = vector.load %arg18[%c0_55, %c0_56, %c0_57] : memref<1x8x32xbf16, #tpu.memory_space<vmem>>, vector<1x8x32xbf16>
    tpu.vector_store %arg18[%c0_55, %c0_56, %c0_57], %115 {strides = array<i32>} : memref<1x8x32xbf16, #tpu.memory_space<vmem>>, vector<1x8x32xbf16>,
    return
  }
  func.func @transform_0(%arg0: i32) -> (i32, i32, i32) {
    %c0_i32 = arith.constant 0 : i32
    %c0_i32_0 = arith.constant 0 : i32
    %c0_i32_1 = arith.constant 0 : i32
    return %arg0, %c0_i32, %c0_i32_0 : i32, i32, i32
  }
  func.func @transform_1(%arg0: i32) -> (i32, i32) {
    %c0_i32 = arith.constant 0 : i32
    %c0_i32_0 = arith.constant 0 : i32
    %c0_i32_1 = arith.constant 0 : i32
    return %c0_i32, %c0_i32_0 : i32, i32
  }
  func.func @transform_2(%arg0: i32) -> (i32, i32) {
    %c0_i32 = arith.constant 0 : i32
    %c0_i32_0 = arith.constant 0 : i32
    %c0_i32_1 = arith.constant 0 : i32
    return %c0_i32, %c0_i32_0 : i32, i32
  }
  func.func @transform_3(%arg0: i32) -> (i32, i32) {
    %c0_i32 = arith.constant 0 : i32
    %c0_i32_0 = arith.constant 0 : i32
    %c0_i32_1 = arith.constant 0 : i32
    return %c0_i32, %c0_i32_0 : i32, i32
  }
  func.func @transform_4(%arg0: i32) -> (i32, i32) {
    %c0_i32 = arith.constant 0 : i32
    %c0_i32_0 = arith.constant 0 : i32
    %c0_i32_1 = arith.constant 0 : i32
    return %c0_i32, %c0_i32_0 : i32, i32
  }
  func.func @transform_5(%arg0: i32) -> (i32, i32) {
    %c0_i32 = arith.constant 0 : i32
    %c0_i32_0 = arith.constant 0 : i32
    %c0_i32_1 = arith.constant 0 : i32
    return %c0_i32, %c0_i32_0 : i32, i32
  }
  func.func @transform_6(%arg0: i32) -> (i32, i32) {
    %c0_i32 = arith.constant 0 : i32
    %c0_i32_0 = arith.constant 0 : i32
    %c0_i32_1 = arith.constant 0 : i32
    return %c0_i32, %c0_i32_0 : i32, i32
  }
  func.func @transform_7(%arg0: i32) -> (i32, i32) {
    %c0_i32 = arith.constant 0 : i32
    %c0_i32_0 = arith.constant 0 : i32
    %c0_i32_1 = arith.constant 0 : i32
    return %c0_i32, %c0_i32_0 : i32, i32
  }
  func.func @transform_8(%arg0: i32) -> (i32, i32) {
    %c0_i32 = arith.constant 0 : i32
    %c0_i32_0 = arith.constant 0 : i32
    %c0_i32_1 = arith.constant 0 : i32
    return %c0_i32, %c0_i32_0 : i32, i32
  }
  func.func @transform_9(%arg0: i32) -> (i32, i32) {
    %c0_i32 = arith.constant 0 : i32
    %c0_i32_0 = arith.constant 0 : i32
    %c0_i32_1 = arith.constant 0 : i32
    return %c0_i32, %c0_i32_0 : i32, i32
  }
  func.func @transform_10(%arg0: i32) -> (i32, i32) {
    %c0_i32 = arith.constant 0 : i32
    %c0_i32_0 = arith.constant 0 : i32
    %c0_i32_1 = arith.constant 0 : i32
    return %c0_i32, %c0_i32_0 : i32, i32
  }
  func.func @transform_11(%arg0: i32) -> (i32, i32) {
    %c0_i32 = arith.constant 0 : i32
    %c0_i32_0 = arith.constant 0 : i32
    %c0_i32_1 = arith.constant 0 : i32
    return %c0_i32, %c0_i32_0 : i32, i32
  }
  func.func @transform_12(%arg0: i32) -> (i32, i32) {
    %c0_i32 = arith.constant 0 : i32
    %c0_i32_0 = arith.constant 0 : i32
    %c0_i32_1 = arith.constant 0 : i32
    return %c0_i32, %c0_i32_0 : i32, i32
  }
  func.func @transform_13(%arg0: i32) -> (i32, i32) {
    %c0_i32 = arith.constant 0 : i32
    %c0_i32_0 = arith.constant 0 : i32
    %c0_i32_1 = arith.constant 0 : i32
    return %c0_i32, %c0_i32_0 : i32, i32
  }
  func.func @transform_14(%arg0: i32) -> (i32, i32) {
    %c0_i32 = arith.constant 0 : i32
    %c0_i32_0 = arith.constant 0 : i32
    %c0_i32_1 = arith.constant 0 : i32
    return %c0_i32, %c0_i32_0 : i32, i32
  }
  func.func @transform_15(%arg0: i32) -> (i32, i32) {
    %c0_i32 = arith.constant 0 : i32
    %c0_i32_0 = arith.constant 0 : i32
    %c0_i32_1 = arith.constant 0 : i32
    return %c0_i32, %c0_i32_0 : i32, i32
  }
  func.func @transform_16(%arg0: i32) -> (i32, i32) {
    %c0_i32 = arith.constant 0 : i32
    %c0_i32_0 = arith.constant 0 : i32
    %c0_i32_1 = arith.constant 0 : i32
    return %c0_i32, %c0_i32_0 : i32, i32
  }
  func.func @transform_17(%arg0: i32) -> (i32, i32, i32) {
    %c0_i32 = arith.constant 0 : i32
    %c0_i32_0 = arith.constant 0 : i32
    %c0_i32_1 = arith.constant 0 : i32
    return %arg0, %c0_i32, %c0_i32_0 : i32, i32, i32
  }
}

</mosaic_0001>

<bundles_post_ra>
// kernel: tpu_custom_call.1
= control target key start
LH: loop header
LB: loop body
LE: loop exit
PB: predicated region body
PF: predicated region fallthrough
CT: control target
= control target key end

     0   :  { %s2297_s0 = inlined_call_operand.vmem [shape: f32[2,8,32], index: 0, kind: input, shape index: {}]   ;;  %s2298_s1 = inlined_call_operand.vmem [shape: bf16[32,32], index: 1, kind: input, shape index: {}]   ;;  %s2299_s2 = inlined_call_operand.vmem [shape: bf16[32,32], index: 2, kind: input, shape index: {}]   ;;  %s2300_s3 = inlined_call_operand.hbm [shape: bf16[32,32], index: 3, kind: input, shape index: {}]   ;;  %s2301_s4 = inlined_call_operand.hbm [shape: f32[1,32], index: 4, kind: input, shape index: {}]   ;;  %s2302_s5 = inlined_call_operand.hbm [shape: f32[1,32], index: 5, kind: input, shape index: {}]   ;;  %s2303_s6 = inlined_call_operand.hbm [shape: f32[1,32], index: 6, kind: input, shape index: {}]   ;;  %s2304_s7 = inlined_call_operand.hbm [shape: bf16[32,32], index: 7, kind: input, shape index: {}]   ;;  %s2305_s8 = inlined_call_operand.hbm [shape: f32[1,32], index: 8, kind: input, shape index: {}]   ;;  %s2306_s9 = inlined_call_operand.hbm [shape: f32[1,32], index: 9, kind: input, shape index: {}]   ;;  %s2307_s10 = inlined_call_operand.vmem [shape: f32[1,32], index: 10, kind: input, shape index: {}]   ;;  %s2308_s11 = inlined_call_operand.vmem [shape: bf16[32,64], index: 11, kind: input, shape index: {}]   ;;  %s2309_s12 = inlined_call_operand.vmem [shape: f32[1,64], index: 12, kind: input, shape index: {}]   ;;  %s2310_s13 = inlined_call_operand.vmem [shape: bf16[64,32], index: 13, kind: input, shape index: {}]   ;;  %s2311_s14 = inlined_call_operand.vmem [shape: f32[1,32], index: 14, kind: input, shape index: {}]   ;;  %s2312_s15 = inlined_call_operand.vmem [shape: f32[1,32], index: 15, kind: input, shape index: {}]   ;;  %s2313_s16 = inlined_call_operand.vmem [shape: f32[1,32], index: 16, kind: input, shape index: {}]   ;;  %s2314_s17 = inlined_call_operand.hbm [shape: bf16[2,8,32], index: 17, kind: output, shape index: {}]  }
   0x1   :  { %2325 = sst [smem:[#allocation26_spill]] %s2297_s0 }
   0x2   :  { %2326 = sst [smem:[#allocation27_spill]] %s2298_s1 }
   0x3   :  { %2327 = sst [smem:[#allocation28_spill]] %s2301_s4 }
   0x4   :  { %2328 = sst [smem:[#allocation29_spill]] %s2303_s6 }
   0x5   :  { %22 = vsyncpa [#allocation3], 0 }
   0x6   :  { %23 = vsyncpa [#allocation6], 0 }
   0x7   :  { %24 = vsyncpa [#allocation9], 0 }
   0x8   :  { %25 = vsyncpa [#allocation12], 0 }
   0x9   :  { %26 = vsyncpa [#allocation4], 0 }
   0xa   :  { %28 = vsyncpa [#allocation4 + $0x1], 0  ;;  %s2014_s24 = smov 0   ;;  %s2016_s25 = smov 0  }
   0xb   :  { %s2018_s26 = smov 0   ;;  %s2020_s27 = smov 0  }
   0xc LB: > { %2329 = sst [smem:[#allocation20_spill]] %s1898_s24  ;;  %s2035_s28 = sadd.s32 4294967295, %s1910_s27   ;;  %s1910_s27 = sphi %s2020_s27, %s2358_s27   ;;  %s1906_s26 = sphi %s2018_s26, %s2360_s26   ;;  %s1902_s25 = sphi %s2016_s25, %s2362_s25   ;;  %s1898_s24 = sphi %s2014_s24, %s2361_s24  }
   0xd   : > { %2330 = sst [smem:[#allocation21_spill]] %s1906_s26  ;;  %s1372_s29 = sadd.s32 4294967294, %s1910_s27  }
   0xe   : > { %2331 = sst [smem:[#allocation22_spill]] %s1910_s27  ;;  %s2039_s0 = sadd.s32 1, %s1910_s27  }
   0xf   : > { %2332 = sst [smem:[#allocation23_spill]] %s2039_s0  ;;  %s403_s30 = sadd.s32 1, %s1906_s26 }
  0x10   : > { %s400_s18 = ssub.s32 %s1910_s27, %s2039_s0  ;;  %p413_p0 = scmp.ne.s32.totalorder %s1906_s26, %s1902_s25 }
  0x11   : > { %p401_p1 = scmp.eq.s32.totalorder %s400_s18, 0  ;;  %p414_p2 = scmp.eq.s32.totalorder %s2035_s28, 1 }
  0x12   : > { %p419_p3 = scmp.ne.s32.totalorder %s1902_s25, %s1898_s24  ;;  %p420_p4 = scmp.eq.s32.totalorder %s1372_s29, 1 }
  0x13   : > { %s2050_s19 = scalar_select %p401_p1, %s1906_s26, %s403_s30  }
  0x14   : > { %p2052_p5 = por %p414_p2, %p413_p0  ;;  %p2056_p6 = por %p420_p4, %p419_p3 }
  0x15   : > { %2333 = sst [smem:[#allocation24_spill]] %s2050_s19  ;;  %p1373_p7 = scmp.ge.s32.totalorder %s1910_s27, 1 }
  0x16   : > { %s2334_s1 = scalar_select %p2052_p5, 1, 0 }
  0x17   : > { %s2335_s20 = scalar_select %p2056_p6, 1, 0 }
  0x18   : > { %p427_p8 = scmp.lt.s32.totalorder %s1910_s27, 3  ;;  %p2321_p9 = scmp.eq.s32.totalorder %s2035_s28, 0 }
  0x19   : > { %2336 = sst [smem:[#allocation25_spill]] %s2335_s20  ;;  %s1912_s22 = smov [#allocation5]  }
  0x1a   : > { %p2063_p10 = pnand %p1373_p7, %p427_p8  ;;  %s459_s23 = sshll.u32 %s1912_s22, 4  ;;  %s460_s23 = int_to_ptr.vmem [resolvable:$true] %s459_s23 }
  0x1b   : > { %s1913_s29 = smov [#allocation8]   ;;  %s1914_s19 = smov [#allocation11]  }
  0x1c   : > { %s2337_s21 = scalar_select %p2063_p10, 1, 0 }
  0x1d   : > { %p1546_p11 = pneg %p2063_p10  ;;  %s481_s30 = sshll.u32 %s1913_s29, 4  ;;  %s482_s30 = int_to_ptr.vmem [resolvable:$true] %s481_s30 }
  0x1e   : > { %s505_s26 = sshll.u32 %s1914_s19, 4  ;;  %s1663_s22 = scalar_lea.vmem %s460_s23, 16  ;;  %s2075_s26 = int_to_ptr.vmem [resolvable:$true] %s505_s26 }
  0x1f   : > { %p2071_p12 = pnand %p2321_p9, %p1546_p11  ;;  %p1664_p0 = scmp.ne.s32.totalorder %s460_s23, %s1663_s22 }
  0x20   : > { %s1670_s29 = scalar_lea.vmem %s460_s23, 32  ;;  %p1671_p3 = scmp.lt.s32.totalorder %s460_s23, %s460_s23 }
  0x21   : > { %p2079_p13 = pneg %p2071_p12  ;;  %p1672_p4 = scmp.lt.s32.totalorder %s1670_s29, %s1663_s22 }
  0x23   : > { %p1666_p1 = pnand %p1664_p0, %p2079_p13  ;;  %p1673_p7 = por %p1672_p4, %p1671_p3 }
  0x25   : > { %p1667_p2 = pneg %p1666_p1 }
  0x27   : > { %p1674_p8 = pnand %p1673_p7, %p1667_p2 }
  0x29   : > { %1677 = shalt.err (!%p1674_p8)
}
  0x2a   : > { %s2340_s4 = sld [smem:[#allocation28_spill]]  ;;  %s1689_s24 = scalar_lea.vmem %s482_s30, 16 }
  0x2b   : > { %p1690_p11 = scmp.ne.s32.totalorder %s482_s30, %s1689_s24  ;;  %s1696_s27 = scalar_lea.vmem %s482_s30, 32 }
  0x2c   : > { %p1697_p0 = scmp.lt.s32.totalorder %s482_s30, %s482_s30  ;;  %p1698_p1 = scmp.lt.s32.totalorder %s1696_s27, %s1689_s24 }
  0x2d   : > { %p1692_p9 = pnand %p1690_p11, %p2079_p13 }
  0x2e   : > { %p1699_p5 = por %p1698_p1, %p1697_p0 }
  0x2f   : > { %p1693_p6 = pneg %p1692_p9 }
  0x30   : > { %1552 = dma.hbm_to_vmem [thread:$0]  (!%p2071_p12), %s2340_s4, 16, %s460_s23, [#allocation6]  }
  0x31   : > { %p1700_p10 = pnand %p1699_p5, %p1693_p6 }
  0x33   : > { %1703 = shalt.err (!%p1700_p10)
}
  0x34   : > { %s2341_s6 = sld [smem:[#allocation29_spill]]  ;;  %s1715_s20 = scalar_lea.vmem %s2075_s26, 16 }
  0x35   : > { %p1716_p2 = scmp.ne.s32.totalorder %s2075_s26, %s1715_s20  ;;  %s1722_s24 = scalar_lea.vmem %s2075_s26, 32 }
  0x36   : > { %p1723_p5 = scmp.lt.s32.totalorder %s2075_s26, %s2075_s26  ;;  %p1724_p6 = scmp.lt.s32.totalorder %s1722_s24, %s1715_s20 }
  0x37   : > { %p1718_p9 = pnand %p1716_p2, %p2079_p13 }
  0x38   : > { %p1725_p10 = por %p1724_p6, %p1723_p5 }
  0x39   : > { %p1719_p3 = pneg %p1718_p9 }
  0x3a   : > { %1558 = dma.hbm_to_vmem [thread:$0]  (!%p2071_p12), %s2341_s6, 16, %s482_s30, [#allocation9]  }
  0x3b   : > { %p1726_p4 = pnand %p1725_p10, %p1719_p3 }
  0x3d   : > { %1729 = shalt.err (!%p1726_p4)
}
  0x3e   : > { %1564 = dma.hbm_to_vmem [thread:$0]  (!%p2071_p12), %s2305_s8, 16, %s2075_s26, [#allocation12]  }
  0x3f   : > { %s1915_s30 = smov [#allocation2]  }
  0x40   : > { %s445_s19 = sshll.u32 %s1915_s30, 4  ;;  %s446_s19 = int_to_ptr.vmem [resolvable:$true] %s445_s19 }
  0x41   : > { %s1741_s22 = scalar_lea.vmem %s446_s19, 256  ;;  %p1749_p0 = scmp.lt.s32.totalorder %s446_s19, %s446_s19 }
  0x42   : > { %p1742_p7 = scmp.ne.s32.totalorder %s446_s19, %s1741_s22  ;;  %p1750_p1 = scmp.lt.s32.totalorder %s1741_s22, %s1741_s22 }
  0x44   : > { %p1744_p8 = pnand %p1742_p7, %p2079_p13  ;;  %p1751_p2 = por %p1750_p1, %p1749_p0 }
  0x46   : > { %p1745_p11 = pneg %p1744_p8 }
  0x48   : > { %p1752_p9 = pnand %p1751_p2, %p1745_p11 }
  0x4a   : > { %1755 = shalt.err (!%p1752_p9)
}
  0x4b   : > { %s1916_s29 = smov 64   ;;  %s1917_s20 = smov 4  }
  0x4c   : > { %1549 = dma.hbm_to_vmem [thread:$0]  (!%p2071_p12), %s2300_s3, 256, %s446_s19, [#allocation3], %s1916_s29, %s1916_s29, %s1917_s20  }
  0x4d   : > { %s1918_s27 = smov [#allocation7]   ;;  %s1919_s30 = smov [#allocation10]  }
  0x4e   : > { %s470_s23 = sshll.u32 %s1918_s27, 4  ;;  %s491_s4 = sshll.u32 %s1919_s30, 4  ;;  %s471_s23 = int_to_ptr.vmem [resolvable:$true] %s470_s23  ;;  %s492_s4 = int_to_ptr.vmem [resolvable:$true] %s491_s4 }
  0x4f   : > { %s1767_s22 = scalar_lea.vmem %s471_s23, 16  ;;  %s1774_s6 = scalar_lea.vmem %s471_s23, 32 }
  0x50   : > { %p1768_p3 = scmp.ne.s32.totalorder %s471_s23, %s1767_s22  ;;  %p1775_p10 = scmp.lt.s32.totalorder %s471_s23, %s471_s23 }
  0x51   : > { %p1776_p4 = scmp.lt.s32.totalorder %s1774_s6, %s1767_s22 }
  0x52   : > { %p1770_p5 = pnand %p1768_p3, %p2079_p13 }
  0x53   : > { %p1777_p7 = por %p1776_p4, %p1775_p10 }
  0x54   : > { %p1771_p6 = pneg %p1770_p5 }
  0x56   : > { %p1778_p8 = pnand %p1777_p7, %p1771_p6 }
  0x58   : > { %1781 = shalt.err (!%p1778_p8)
}
  0x59   : > { %1555 = dma.hbm_to_vmem [thread:$0]  (!%p2071_p12), %s2302_s5, 16, %s471_s23, [#allocation6]  }
  0x5a   : > { %s1793_s24 = scalar_lea.vmem %s492_s4, 256  ;;  %p1801_p2 = scmp.lt.s32.totalorder %s492_s4, %s492_s4 }
  0x5b   : > { %p1794_p11 = scmp.ne.s32.totalorder %s492_s4, %s1793_s24  ;;  %p1802_p9 = scmp.lt.s32.totalorder %s1793_s24, %s1793_s24 }
  0x5d   : > { %p1796_p0 = pnand %p1794_p11, %p2079_p13  ;;  %p1803_p3 = por %p1802_p9, %p1801_p2 }
  0x5f   : > { %p1797_p1 = pneg %p1796_p0 }
  0x61   : > { %p1804_p5 = pnand %p1803_p3, %p1797_p1 }
  0x63   : > { %1807 = shalt.err (!%p1804_p5)
}
  0x64   : > { %1561 = dma.hbm_to_vmem [thread:$0]  (!%p2071_p12), %s2304_s7, 256, %s492_s4, [#allocation9], %s1916_s29, %s1916_s29, %s1917_s20  }
  0x65   : > { %s1920_s23 = smov [#allocation13]  }
  0x66   : > { %s516_s30 = sshll.u32 %s1920_s23, 4  ;;  %s517_s30 = int_to_ptr.vmem [resolvable:$true] %s516_s30 }
  0x67   : > { %s1819_s22 = scalar_lea.vmem %s517_s30, 16  ;;  %s1826_s19 = scalar_lea.vmem %s517_s30, 32 }
  0x68   : > { %p1820_p6 = scmp.ne.s32.totalorder %s517_s30, %s1819_s22  ;;  %p1827_p7 = scmp.lt.s32.totalorder %s517_s30, %s517_s30 }
  0x69   : > { %p1828_p8 = scmp.lt.s32.totalorder %s1826_s19, %s1819_s22 }
  0x6a   : > { %p1822_p10 = pnand %p1820_p6, %p2079_p13 }
  0x6b   : > { %p1829_p11 = por %p1828_p8, %p1827_p7 }
  0x6c   : > { %p1823_p4 = pneg %p1822_p10 }
  0x6e   : > { %p1830_p0 = pnand %p1829_p11, %p1823_p4 }
  0x70   : > { %1833 = shalt.err (!%p1830_p0)
}
  0x71   : > { %1567 = dma.hbm_to_vmem [thread:$0]  (!%p2071_p12), %s2306_s9, 16, %s517_s30, [#allocation12]  }
  0x72   : > { %p2342_p1 = scmp.ne.s32.totalorder %s2337_s21, 0 }
  0x73   : > { %p2343_p2 = scmp.eq.s32.totalorder (!%p2342_p1), %s2035_s28, 0 }
  0x74   : > { %557 = sbr.rel (%p2342_p1) target bundleno = 2276 (0x8e4), region = 88 }
  0x79   : > { %1877 = dma.done.wait (%p2343_p2), [#allocation3], 256   ;;  %p2344_p13 = pmov %p2343_p2 }
  0x7a   : > { %p2345_p9 = pmov %p2343_p2 }
  0x7b   : > { %1879 = vsyncadd (%p2344_p13), [#allocation3], 4294967040 }
  0x7c   : > { %1881 = dma.done.wait (%p2345_p9), [#allocation6], 32   ;;  %p2346_p3 = pmov %p2343_p2 }
  0x7d   : > { %p2347_p5 = pmov %p2343_p2 }
  0x7e   : > { %1883 = vsyncadd (%p2346_p3), [#allocation6], 4294967264 }
  0x7f   : > { %1885 = dma.done.wait (%p2347_p5), [#allocation9], 272   ;;  %p2348_p12 = pmov %p2343_p2 }
  0x80   : > { %p2349_p6 = pmov %p2343_p2 }
  0x81   : > { %1887 = vsyncadd (%p2348_p12), [#allocation9], 4294967024 }
  0x82   : > { %1889 = dma.done.wait (%p2349_p6), [#allocation12], 32   ;;  %p2350_p10 = pmov %p2343_p2 }
  0x83   : > { %p632_p4 = scmp.lt.s32.totalorder %s2035_s28, 1  ;;  %v1921_v0 = vmov 0.0   ;;  %vm1922_vm0 = vmmov 0   ;;  %v1630_v1 = vld [vmem:[%s2299_s2 + $0x8] sm:$0xff]   ;;  %s2351_s6 = sld [smem:[#allocation27_spill]]  ;;  %v1632_v3 = vld [vmem:[%s2299_s2] sm:$0xff]   ;;  %v881_v24 = vlaneseq }
  0x84   : > { %1891 = vsyncadd (%p2350_p10), [#allocation12], 4294967264  ;;  %1460 = vmatprep.subr.bf16.mxu1 %v1921_v0  ;;  %1452 = vmatprep.subr.bf16.mxu0 %v1921_v0  ;;  %s2352_s30 = sld [smem:[#allocation26_spill]]  ;;  %vm662_vm1 = vcmask 261120   ;;  %v1396_v7 = vld [vmem:[#allocation7] ss:$0 sm:$0xff] }
  0x85   : > { %1464 = vmatprep.mubr.msk.bf16.mxu1 %vm1922_vm0, %v1921_v0  ;;  %s633_s4 = scalar_select %p632_p4, %s2035_s28, 1  ;;  %1456 = vmatprep.mubr.msk.bf16.mxu0 %vm1922_vm0, %v1921_v0  ;;  %v1392_v12 = vld [vmem:[#allocation5] ss:$0 sm:$0xff]  ;;  %v1634_v22 = vld [vmem:[#allocation2 + $0x8] sm:$0xff]   ;;  %v1635_v23 = vld [vmem:[#allocation2] sm:$0xff]   ;;  %v882_v25 = vshrl.u32 %v881_v24, 7 }
  0x86   : > { %1461 = vmatpush3.bf16.msra.mxu1 %v1630_v1  ;;  %v884_v26 = vand.u32 127, %v881_v24  ;;  %vm887_vm3 = vcmask 64512   ;;  %v1400_v38 = vld [vmem:[#allocation8] ss:$0 sm:$0xff]  ;;  %vm903_vm4 = vcmask 1043456   ;;  %v1636_v46 = vld [vmem:[#allocation10 + $0x8] sm:$0xff]  }
  0x87   : > { %s1391_s0 = sshll.u32 %s633_s4, 3  ;;  %1462 = vmatprep.subr.bf16.mxu1 %v1921_v0  ;;  %v1637_v51 = vld [vmem:[#allocation10] sm:$0xff]   ;;  %v1406_v57 = vld [vmem:[#allocation11] ss:$0 sm:$0xff]  ;;  %vm1153_vm5 = vcmask 523264   ;;  %s629_s27 = sand.u32 1, %s1902_s25  }
  0x88   : > { %vm885_vm2 = vcmp.le.s32.totalorder %v884_v26, %v882_v25  ;;  %s1390_s23 = sshll.u32 %s629_s27, 2  ;;  %s1425_s24 = sshll.u32 %s2035_s28, 6  ;;  %vm1228_vm6 = vcmask 257024  }
  0x89   : > { %v1631_v2 = vld [vmem:[%s2351_s6 + $0x8] sm:$0xff]   ;;  %v1633_v4 = vld [vmem:[%s2351_s6] sm:$0xff]   ;;  %s631_s4 = scalar_lea.vmem [#allocation14], %s1390_s23  ;;  %s1242_s29 = scalar_lea.hbm %s2314_s17, %s1425_s24 }
  0x8a   : > { %s635_s22 = scalar_lea.vmem %s2352_s30, %s1391_s0  ;;  %1453 = vmatpush3.bf16.msra.mxu0 %v1631_v2  ;;  %1463 = vmatpush3.bf16.msra.mxu1 %v1632_v3  ;;  %s1244_s0 = sshll.u32 %s631_s4, 4  ;;  %s1245_s0 = int_to_ptr.vmem [resolvable:$true] %s1244_s0 }
  0x8b   : > { %1454 = vmatprep.subr.bf16.mxu0 %v1921_v0  ;;  %v2187_v5 = vld [vmem:[%s635_s22] sm:$0xff]  ;;  %1476 = vmatprep.subr.bf16.mxu1 %v1921_v0  ;;  %s1231_s20 = scalar_lea.sflag [#allocation4], %s629_s27  ;;  %s1834_s30 = scalar_lea.vmem %s1245_s0, 64 }
  0x8c   : > { %v638_v6 = vpack.c.bf16 %v2187_v5, %v2187_v5  ;;  %p1835_p7 = scmp.ne.s32.totalorder %s1245_s0, %s1834_s30  ;;  %p2353_p8 = scmp.ne.s32.totalorder %s2334_s1, 0 }
  0x8d   : > { %s1923_s22 = smov [#allocation14]  }
  0x8e   : > { %1455 = vmatpush3.bf16.msra.mxu0 %v1633_v4  ;;  %1465 = vmatmul.mubr.msk.bf16.vlgmr.msra.gmra.mxu1 %vm662_vm1, %v638_v6  ;;  %p1836_p11 = pnand %p1835_p7, %p2353_p8  ;;  %s1838_s19 = sshll.u32 %s1923_s22, 4  ;;  %s1839_s19 = int_to_ptr.vmem [resolvable:$false] %s1838_s19 }
  0x8f   : > { %1468 = vmatprep.subr.bf16.mxu0 %v1921_v0  ;;  %1478 = vmatprep.mubr.msk.bf16.mxu1 %vm1922_vm0, %v1921_v0  ;;  %s1840_s28 = scalar_lea.vmem %s1839_s19, 128  ;;  %p1841_p1 = scmp.lt.s32.totalorder %s1245_s0, %s1839_s19 }
  0x90   : > { %p1837_p0 = pneg %p1836_p11  ;;  %p1842_p2 = scmp.lt.s32.totalorder %s1840_s28, %s1834_s30 }
  0x91   : > { %1457 = vmatmul.mubr.msk.bf16.vlgmr.msra.gmra.mxu0 %vm662_vm1, %v638_v6 }
  0x92   : > { %1472 = vmatprep.mubr.msk.bf16.mxu0 %vm1922_vm0, %v1921_v0  ;;  %1469 = vmatpush3.bf16.msra.mxu0 %v1634_v22  ;;  %v1643_v22 = vld [vmem:[%s2310_s13] sm:$0xff]   ;;  %p1843_p13 = por %p1842_p2, %p1841_p1 }
  0x93   : > { %1470 = vmatprep.subr.bf16.mxu0 %v1921_v0 }
  0x94   : > { %p1844_p9 = pnand %p1843_p13, %p1837_p0 }
  0x96   : > { %1471 = vmatpush3.bf16.msra.mxu0 %v1635_v23  ;;  %v1412_v23 = vld [vmem:[%s2309_s12] ss:$0 sm:$0xff] }
  0x97   : > { %1482 = vmatprep.subr.bf16.mxu0 %v1921_v0 }
  0x99   : > { %1473 = vmatmul.mubr.msk.bf16.vlgmr.msra.gmra.mxu0 %vm662_vm1, %v638_v6 }
  0x9a   : > { %1484 = vmatprep.mubr.msk.bf16.mxu0 %vm1922_vm0, %v1921_v0 }
 0x14e   : > { %v763_v8 = vpop.f32.mrf.mxu1 }
 0x14f   : > { %v764_v9 = vadd.f32 %v1396_v7, %v763_v8  ;;  %v1638_v8 = vld [vmem:[%s2308_s11 + $0x8] sm:$0xff]  }
 0x150   : > { %v1466_v11 = vpop.f32.mrf.mxu1 }
 0x151   : > { %v700_v10 = vpop.f32.mrf.mxu0  ;;  %v833_v13 = vpack.c.bf16 %v764_v9, %v764_v9  ;;  %v1640_v9 = vld [vmem:[%s2310_s13 + $0x18] sm:$0xff]  }
 0x152   : > { %v766_v15 = vpop.f32.mrf.mxu1  ;;  %v701_v17 = vadd.f32 %v1392_v12, %v700_v10  ;;  %v1641_v10 = vld [vmem:[%s2310_s13 + $0x10] sm:$0xff]  }
 0x153   : > { %v1458_v14 = vpop.f32.mrf.mxu0  ;;  %v839_v16 = vsel %vm662_vm1, %v833_v13, 0  ;;  %v1410_v15 = vld [vmem:[#allocation13] ss:$0 sm:$0xff] }
 0x154   : > { %v1467_v19 = vpop.f32.mrf.mxu1  ;;  %1477 = vmatpush3.bf16.xpose.msra.mxu1 %v839_v16  ;;  %v832_v21 = vpack.c.bf16 %v701_v17, %v701_v17  ;;  %v1411_v17 = vld [vmem:[%s2307_s10] ss:$0 sm:$0xff] }
 0x155   : > { %v703_v18 = vpop.f32.mrf.mxu0  ;;  %1488 = vmatprep.subr.bf16.mxu1 %v1921_v0 }
 0x157   : > { %v1459_v20 = vpop.f32.mrf.mxu0 }
 0x159   : > { %v826_v39 = vpop.f32.mrf.mxu0 }
 0x15a   : > { %v827_v40 = vadd.f32 %v1400_v38, %v826_v39 }
 0x15b   : > { %1479 = vmatmul.mubr.msk.bf16.vlgmr.msra.gmra.mxu1 %vm662_vm1, %v832_v21  ;;  %v1474_v41 = vpop.f32.mrf.mxu0  ;;  %v1642_v21 = vld [vmem:[%s2310_s13 + $0x8] sm:$0xff]  }
 0x15c   : > { %1492 = vmatprep.mubr.msk.bf16.mxu1 %vm1922_vm0, %v1921_v0  ;;  %v834_v42 = vpack.c.bf16 %v827_v40, %v827_v40  ;;  %1489 = vmatpush3.bf16.msra.mxu1 %v1636_v46 }
 0x15d   : > { %v829_v43 = vpop.f32.mrf.mxu0  ;;  %1490 = vmatprep.subr.bf16.mxu1 %v1921_v0 }
 0x15e   : > { %v905_v44 = vsel %vm903_vm4, %v834_v42, 0 }
 0x15f   : > { %v1475_v45 = vpop.f32.mrf.mxu0  ;;  %1483 = vmatpush3.bf16.msra.mxu0 %v905_v44 }
 0x160   : > { %1496 = vmatprep.subr.bf16.mxu0 %v1921_v0  ;;  %1491 = vmatpush3.bf16.msra.mxu1 %v1637_v51 }
 0x161   : > { %1504 = vmatprep.subr.bf16.mxu1 %v1921_v0 }
 0x21b   : > { %v875_v27 = vpop.f32.mrf.mxu1 }
 0x21c   : > { %v886_v28 = vsel %vm885_vm2, %v875_v27, -1e+30 }
 0x21d   : > { %v1480_v29 = vpop.f32.mrf.mxu1  ;;  %v888_v30 = vsel %vm887_vm3, %v886_v28, -inf }
 0x21e   : > { %889 = vmax.xlane.f32.xlu0 %v888_v30 }
 0x21f   : > { %v878_v31 = vpop.f32.mrf.mxu1 }
 0x221   : > { %v1481_v32 = vpop.f32.mrf.mxu1 }
 0x2a7   : > { %v890_v33 = vpop.xlane.xlu0 %889 }
 0x2a8   : > { %v891_v34 = vsub.f32 %v886_v28, %v890_v33 }
 0x2aa   : > { %v892_v35 = vmul.f32 1.442695, %v891_v34 }
 0x2ac   : > { %1644 = vpow2.f32 %v892_v35 }
 0x2b9   : > { %v1645_v36 = vpop.eup %1644 }
 0x2ba   : > { %v894_v37 = vsel %vm887_vm3, %v1645_v36, 0.0 }
 0x2bb   : > { %895 = vadd.xlane.f32.xlu0 %v894_v37 }
 0x344   : > { %v896_v47 = vpop.xlane.xlu0 %895 }
 0x345   : > { %1646 = vrcp.f32 %v896_v47  ;;  %v1422_v47 = vld [vmem:[%s2312_s15] ss:$0 sm:$0xff] }
 0x352   : > { %v1647_v48 = vpop.eup %1646 }
 0x353   : > { %v898_v49 = vmul.f32 %v1647_v48, %v1645_v36 }
 0x355   : > { %v899_v50 = vpack.c.bf16 %v898_v49, %v898_v49  ;;  %v1423_v49 = vld [vmem:[%s2313_s16] ss:$0 sm:$0xff] }
 0x357   : > { %1485 = vmatmul.mubr.msk.bf16.vlgmr.msra.gmra.mxu0 %vm887_vm3, %v899_v50 }
 0x358   : > { %1500 = vmatprep.mubr.msk.bf16.mxu0 %vm1922_vm0, %v1921_v0  ;;  %1497 = vmatpush3.bf16.msra.mxu0 %v1638_v8 }
 0x359   : > { %1498 = vmatprep.subr.bf16.mxu0 %v1921_v0 }
 0x417   : > { %v941_v52 = vpop.f32.mrf.mxu0 }
 0x418   : > { %v947_v53 = vpack.c.bf16 %v941_v52, %v941_v52 }
 0x419   : > { %v1486_v54 = vpop.f32.mrf.mxu0 }
 0x41a   : > { %1493 = vmatmul.mubr.msk.bf16.vlgmr.msra.gmra.mxu1 %vm662_vm1, %v947_v53 }
 0x41b   : > { %v944_v55 = vpop.f32.mrf.mxu0  ;;  %1512 = vmatprep.mubr.msk.bf16.mxu1 %vm1922_vm0, %v1921_v0  ;;  %1505 = vmatpush3.bf16.msra.mxu1 %v1640_v9 }
 0x41c   : > { %1506 = vmatprep.subr.bf16.mxu1 %v1921_v0 }
 0x41d   : > { %v1487_v56 = vpop.f32.mrf.mxu0 }
 0x41f   : > { %1507 = vmatpush3.bf16.msra.mxu1 %v1641_v10 }
 0x420   : > { %1508 = vmatprep.subr.bf16.mxu1 %v1921_v0 }
 0x423   : > { %1509 = vmatpush3.bf16.msra.mxu1 %v1642_v21 }
 0x424   : > { %1510 = vmatprep.subr.bf16.mxu1 %v1921_v0  ;;  %v1416_v0 = vld [vmem:[%s2311_s14] ss:$0 sm:$0xff] }
 0x427   : > { %1511 = vmatpush3.bf16.msra.mxu1 %v1643_v22 }
 0x4da   : > { %v1008_v58 = vpop.f32.mrf.mxu1 }
 0x4db   : > { %v1009_v59 = vadd.f32 %v1406_v57, %v1008_v58 }
 0x4dc   : > { %v1494_v60 = vpop.f32.mrf.mxu1 }
 0x4dd   : > { %v1014_v61 = vadd.f32 %v1009_v59, %v2187_v5  ;;  %v1639_v5 = vld [vmem:[%s2308_s11] sm:$0xff]  }
 0x4de   : > { %v1011_v62 = vpop.f32.mrf.mxu1  ;;  %1499 = vmatpush3.bf16.msra.mxu0 %v1639_v5 }
 0x4df   : > { %v1015_v63 = vsel %vm662_vm1, %v1014_v61, 0.0 }
 0x4e0   : > { %1016 = vadd.xlane.f32.xlu1 %v1015_v63  ;;  %v1495_v1 = vpop.f32.mrf.mxu1 }
 0x569   : > { %v1017_v2 = vpop.xlane.xlu1 %1016 }
 0x56a   : > { %v1019_v3 = vmul.f32 0.03125, %v1017_v2 }
 0x56c   : > { %v1020_v4 = vsub.f32 %v1014_v61, %v1019_v3 }
 0x56e   : > { %v1021_v6 = vmul.f32 %v1020_v4, %v1020_v4 }
 0x570   : > { %v1022_v7 = vsel %vm662_vm1, %v1021_v6, 0.0 }
 0x571   : > { %1023 = vadd.xlane.f32.xlu1 %v1022_v7 }
 0x5fa   : > { %v1024_v11 = vpop.xlane.xlu1 %1023 }
 0x5fb   : > { %v1025_v12 = vmul.f32 0.03125, %v1024_v11 }
 0x5fd   : > { %v1026_v13 = vadd.f32 1e-05, %v1025_v12 }
 0x5ff   : > { %1648 = vrsqrt.f32 %v1026_v13 }
 0x60c   : > { %v1649_v14 = vpop.eup %1648 }
 0x60d   : > { %v1028_v16 = vmul.f32 %v1649_v14, %v1020_v4 }
 0x60f   : > { %v1036_v18 = vmul.f32 %v1410_v15, %v1028_v16 }
 0x611   : > { %v1044_v19 = vadd.f32 %v1411_v17, %v1036_v18 }
 0x613   : > { %v1045_v20 = vpack.c.bf16 %v1044_v19, %v1044_v19 }
 0x615   : > { %1501 = vmatmul.mubr.msk.bf16.vlgmr.msra.gmra.mxu0 %vm662_vm1, %v1045_v20 }
 0x6d5   : > { %v1106_v24 = vpop.f32.mrf.mxu0 }
 0x6d6   : > { %v1107_v25 = vadd.f32 %v1412_v23, %v1106_v24 }
 0x6d7   : > { %v1502_v26 = vpop.f32.mrf.mxu0 }
 0x6d8   : > { %v1112_v27 = vmax.f32 %v1107_v25, 0.0 }
 0x6d9   : > { %v1109_v28 = vpop.f32.mrf.mxu0 }
 0x6da   : > { %v1113_v29 = vpack.c.bf16 %v1112_v27, %v1112_v27 }
 0x6db   : > { %v1503_v30 = vpop.f32.mrf.mxu0 }
 0x6dc   : > { %1513 = vmatmul.mubr.msk.bf16.vlgmr.msra.gmra.mxu1 %vm1153_vm5, %v1113_v29 }
 0x79c   : > { %v1191_v31 = vpop.f32.mrf.mxu1 }
 0x79d   : > { %v1192_v32 = vadd.f32 %v1416_v0, %v1191_v31 }
 0x79e   : > { %v1514_v33 = vpop.f32.mrf.mxu1 }
 0x79f   : > { %v1197_v34 = vadd.f32 %v1192_v32, %v1044_v19 }
 0x7a0   : > { %v1194_v35 = vpop.f32.mrf.mxu1 }
 0x7a1   : > { %v1198_v36 = vsel %vm662_vm1, %v1197_v34, 0.0 }
 0x7a2   : > { %1199 = vadd.xlane.f32.xlu0 %v1198_v36  ;;  %v1515_v37 = vpop.f32.mrf.mxu1 }
 0x82b   : > { %v1200_v38 = vpop.xlane.xlu0 %1199 }
 0x82c   : > { %v1201_v39 = vmul.f32 0.03125, %v1200_v38 }
 0x82e   : > { %v1202_v40 = vsub.f32 %v1197_v34, %v1201_v39 }
 0x830   : > { %v1203_v41 = vmul.f32 %v1202_v40, %v1202_v40 }
 0x832   : > { %v1204_v42 = vsel %vm662_vm1, %v1203_v41, 0.0 }
 0x833   : > { %1205 = vadd.xlane.f32.xlu1 %v1204_v42 }
 0x8bc   : > { %v1206_v43 = vpop.xlane.xlu1 %1205 }
 0x8bd   : > { %v1207_v44 = vmul.f32 0.03125, %v1206_v43 }
 0x8bf   : > { %v1208_v45 = vadd.f32 1e-05, %v1207_v44 }
 0x8c1   : > { %1650 = vrsqrt.f32 %v1208_v45 }
 0x8ce   : > { %v1651_v46 = vpop.eup %1650 }
 0x8cf   : > { %v1210_v48 = vmul.f32 %v1651_v46, %v1202_v40 }
 0x8d1   : > { %v1218_v50 = vmul.f32 %v1422_v47, %v1210_v48 }
 0x8d3   : > { %v1226_v51 = vadd.f32 %v1423_v49, %v1218_v50 }
 0x8d5   : > { %v1227_v52 = vpack.c.bf16 %v1226_v51, %v1226_v51 }
 0x8d7   : > { %1229 = vst.msk [vmem:[%s631_s4] sm:$0xf] %vm1228_vm6, %v1227_v52 }
 0x8d8   : > { %1847 = shalt.err (!%p1844_p9)
}
 0x8d9   : > { %s1848_s23 = scalar_lea.hbm %s1242_s29, 64  ;;  %s1852_s24 = scalar_lea.hbm %s2314_s17, 128 }
 0x8da   : > { %p1849_p3 = scmp.ne.s32.totalorder %s1242_s29, %s1848_s23  ;;  %p1853_p6 = scmp.lt.s32.totalorder %s1242_s29, %s2314_s17 }
 0x8db   : > { %p1854_p10 = scmp.lt.s32.totalorder %s1852_s24, %s1848_s23 }
 0x8dc   : > { %p1850_p5 = pnand %p1849_p3, %p2353_p8 }
 0x8dd   : > { %p1855_p4 = por %p1854_p10, %p1853_p6 }
 0x8de   : > { %p1851_p12 = pneg %p1850_p5 }
 0x8e0   : > { %p1856_p7 = pnand %p1855_p4, %p1851_p12 }
 0x8e2   : > { %1859 = shalt.err (!%p1856_p7)
}
 0x8e3   : > { %1544 = dma.vmem_to_hbm [thread:$0]  (%p2353_p8), %s1245_s0, 64, %s1242_s29, %s1231_s20  }
 0x8e4 PF: > { %s2354_s18 = sld [smem:[#allocation22_spill]] }
 0x8e5   : > { %s2355_s30 = sld [smem:[#allocation20_spill]] }
 0x8e6   : > { %s2356_s22 = sld [smem:[#allocation25_spill]] }
 0x8ea   : > { %p1586_p11 = scmp.ge.s32.totalorder %s2354_s18, 2 }
 0x8eb   : > { %s1256_s19 = sand.u32 1, %s2355_s30  }
 0x8ec   : > { %p2357_p0 = scmp.ne.s32.totalorder %s2356_s22, 0  ;;  %s1257_s28 = scalar_lea.sflag [#allocation4], %s1256_s19 }
 0x8ee   : > { %p1569_p1 = pnand %p1586_p11, %p2357_p0 }
 0x8f0   : > { %p1570_p2 = pneg %p1569_p1 }
 0x8f2   : > { %1893 = dma.done.wait (%p1570_p2), %s1257_s28, 64  }
 0x8f3   : > { %1895 = vsyncadd (%p1570_p2), %s1257_s28, 4294967232  ;;  %s2358_s27 = sld [smem:[#allocation23_spill]]  ;;  %s2361_s24 = smov %s1902_s25 }
 0x8f4   : > { %s2359_s23 = sld [smem:[#allocation21_spill]] }
 0x8f5   : > { %s2360_s26 = sld [smem:[#allocation24_spill]] }
 0x8f9   : > { %p31_p13 = scmp.ge.s32.totalorder %s2358_s27, 4  }
 0x8fa   : > { %s2362_s25 = smov %s2359_s23 }
 0x8fb   :  { %33 = sbr.rel (!%p31_p13) target bundleno = 12 (0xc), region = 152 }
 0x900   :  { %1262 = vsyncpa [#allocation3], 1 }
 0x901   :  { %1264 = vsyncpa [#allocation3 + $0x1], 1 }
 0x902   :  { %1265 = vsyncpa [#allocation6], 1 }
 0x903   :  { %1266 = vsyncpa [#allocation9], 1 }
 0x904   :  { %1267 = vsyncpa [#allocation12], 1 }
 0x905   :  { %1268 = vsyncpa [#allocation4], 1 }
 0x906   :  { %1270 = vsyncpa [#allocation4 + $0x1], 1 }

</bundles_post_ra>
